<compile_context>
chip_gen: v6e
topology: v6e:2x2x1
jax: 0.10.0
libtpu: 0.0.40
codegen_flags: <defaults>
</compile_context>

<pallas_src>
import jax
import jax.numpy as jnp
from jax.experimental import pallas as pl
from jax.experimental.pallas import tpu as pltpu

FLAG_CONTINUOUS_ACTION = False
PARAM_DTYPE = jnp.bfloat16   # storage dtype for weights/biases; accumulation stays f32
LANE = 128
SUBLANE = 8


def _round_up(n, m):
    return ((n + m - 1) // m) * m


def _make_actor_kernel(in_pad, pad, out_size, continuous):
    """Fused 3-layer MLP (+ masked softmax) over one (tb, in_pad) batch tile."""

    def kernel(x_ref, w_ref, b_ref, out_ref):
        x = x_ref[...].astype(jnp.float32)                                  # (tb, in_pad)

        # Static, sublane-aligned carves out of the packed parameter slabs (bf16 -> f32).
        w1 = w_ref[0:in_pad, :].astype(jnp.float32)                         # (in_pad, pad)
        w2 = w_ref[in_pad:in_pad + pad, :].astype(jnp.float32)              # (pad, pad)
        w3 = w_ref[in_pad + pad:in_pad + 2 * pad, :].astype(jnp.float32)    # (pad, pad)
        b1 = b_ref[0:1, :].astype(jnp.float32)                              # (1, pad)
        b2 = b_ref[1:2, :].astype(jnp.float32)
        b3 = b_ref[2:3, :].astype(jnp.float32)

        # fc1 + ReLU, fc2 + ReLU, fc3 — everything lane-padded to `pad` (padded lanes stay 0).
        h = jnp.maximum(jnp.dot(x, w1, preferred_element_type=jnp.float32) + b1, 0.0)
        h = jnp.maximum(jnp.dot(h, w2, preferred_element_type=jnp.float32) + b2, 0.0)
        logits = jnp.dot(h, w3, preferred_element_type=jnp.float32) + b3    # (tb, pad)

        if continuous:
            out_ref[...] = logits
        else:
            # Mask padded logit lanes so they do not corrupt the softmax (review concern #3).
            lane_idx = jax.lax.broadcasted_iota(jnp.int32, logits.shape, 1)
            logits = jnp.where(lane_idx < out_size, logits, -1e30)
            m = jnp.max(logits, axis=-1, keepdims=True)
            e = jnp.exp(logits - m)
            denom = jnp.sum(e, axis=-1, keepdims=True)
            out_ref[...] = e * pl.reciprocal(denom, approx=True)            # EUP slot

    return kernel


def pack_params(params, param_dtype=PARAM_DTYPE):
    """Coalesce (w1,w2,w3) and (b1,b2,b3) into two lane-padded slabs (one DMA each)."""
    w1, w2, w3 = params["w1"], params["w2"], params["w3"]
    b1, b2, b3 = params["b1"], params["b2"], params["b3"]
    in_size, hidden = w1.shape
    out_size = w3.shape[1]

    in_pad = _round_up(in_size, SUBLANE)
    pad = _round_up(max(hidden, out_size), LANE)

    def pad2(a, rows, cols):
        return jnp.pad(a, ((0, rows - a.shape[0]), (0, cols - a.shape[1])))

    w_slab = jnp.concatenate(
        [pad2(w1, in_pad, pad), pad2(w2, pad, pad), pad2(w3, pad, pad)], axis=0
    ).astype(param_dtype)                                       # (in_pad + 2*pad, pad)
    b_slab = jnp.concatenate(
        [pad2(b1, 1, pad), pad2(b2, 1, pad), pad2(b3, 1, pad),
         jnp.zeros((SUBLANE - 3, pad), jnp.float32)], axis=0
    ).astype(param_dtype)                                       # (8, pad)

    meta = {"in_size": in_size, "in_pad": in_pad, "hidden": hidden,
            "out_size": out_size, "pad": pad}
    return w_slab, b_slab, meta


def actor_forward(x, w_slab, b_slab, meta, *, block_b=512):
    """x: (B, input_size) float32.  Returns (B, output_size) policy probabilities."""
    B = x.shape[0]
    in_size, in_pad = meta["in_size"], meta["in_pad"]
    out_size, pad = meta["out_size"], meta["pad"]

    x = x.astype(jnp.float32)
    if in_pad != in_size:
        x = jnp.pad(x, ((0, 0), (0, in_pad - in_size)))

    tb = min(block_b, B)          # sweep block_b per generation (smaller on v7x's 64 MiB VMEM)
    grid = (pl.cdiv(B, tb),)

    kernel = _make_actor_kernel(in_pad, pad, out_size, FLAG_CONTINUOUS_ACTION)

    out_padded = pl.pallas_call(
        kernel,
        out_shape=jax.ShapeDtypeStruct((B, pad), jnp.float32),
        grid_spec=pltpu.PrefetchScalarGridSpec(
            num_scalar_prefetch=0,
            grid=grid,
            in_specs=[
                pl.BlockSpec((tb, in_pad), lambda i: (i, 0)),    # batch-tiled input
                pl.BlockSpec(w_slab.shape, lambda i: (0, 0)),    # resident packed weights
                pl.BlockSpec(b_slab.shape, lambda i: (0, 0)),    # resident packed biases
            ],
            out_specs=pl.BlockSpec((tb, pad), lambda i: (i, 0)),  # lane-dense (128-wide) output
        ),
        compiler_params=pltpu.CompilerParams(
            dimension_semantics=("parallel",),                    # megacore sharding on v7x
        ),
    )(x, w_slab, b_slab)

    return out_padded[:, :out_size]


def init_params(key, input_size, hidden_size, output_size):
    """Deterministic init mimicking PyTorch nn.Linear default (U(-1/sqrt(fan_in), +1/sqrt(fan_in)))."""
    def linear(k, fan_in, fan_out):
        kw, kb = jax.random.split(k)
        bound = 1.0 / jnp.sqrt(fan_in)
        w = jax.random.uniform(kw, (fan_in, fan_out), jnp.float32, -bound, bound)
        b = jax.random.uniform(kb, (1, fan_out), jnp.float32, -bound, bound)
        return w, b

    k1, k2, k3 = jax.random.split(key, 3)
    w1, b1 = linear(k1, input_size, hidden_size)
    w2, b2 = linear(k2, hidden_size, hidden_size)
    w3, b3 = linear(k3, hidden_size, output_size)
    return {"w1": w1, "b1": b1, "w2": w2, "b2": b2, "w3": w3, "b3": b3}


def actor_reference(x, p, param_dtype=PARAM_DTYPE):
    # Reference uses the same bf16-stored parameters (cast back to f32) as the kernel.
    q = lambda a: a.astype(param_dtype).astype(jnp.float32)
    h = jnp.maximum(x @ q(p["w1"]) + q(p["b1"]), 0.0)
    h = jnp.maximum(h @ q(p["w2"]) + q(p["b2"]), 0.0)
    logits = h @ q(p["w3"]) + q(p["b3"])
    if FLAG_CONTINUOUS_ACTION:
        return logits
    return jax.nn.softmax(logits, axis=-1)


if __name__ == "__main__":
    key = jax.random.PRNGKey(0)
    k_x, k_p = jax.random.split(key)

    batch, input_size, hidden_size, output_size = 8, 16, 32, 8
    x = jax.random.normal(k_x, (batch, input_size), jnp.float32)
    params = init_params(k_p, input_size, hidden_size, output_size)

    w_slab, b_slab, meta = pack_params(params)
    out = actor_forward(x, w_slab, b_slab, meta)
    out = jax.block_until_ready(out)

    ref = actor_reference(x, params)
    assert out.shape == (batch, output_size)
    # bf16 parameter storage + approx reciprocal -> ~1e-3-scale tolerance (per review).
    assert jnp.allclose(out, ref, atol=2e-3, rtol=2e-3)
    # softmax rows must sum to ~1 (approx reciprocal allows a small slack)
    assert jnp.allclose(jnp.sum(out, axis=-1), jnp.ones((batch,)), atol=5e-3)

    print("KERNEL_OK")
</pallas_src>

<mosaic_0001>
module attributes {stable_mosaic.version = 11 : i64} {
  func.func @kernel(%arg0: i32, %arg1: memref<8x16xf32, #tpu.memory_space<vmem>>, %arg2: memref<272x128xbf16, #tpu.memory_space<vmem>>, %arg3: memref<8x128xbf16, #tpu.memory_space<vmem>>, %arg4: memref<8x128xf32, #tpu.memory_space<vmem>>) attributes {dimension_semantics = [#tpu.dimension_semantics<parallel>], iteration_bounds = array<i64: 1>, scalar_prefetch = 0 : i64, scratch_operands = 0 : i64, tpu.core_type = #tpu.core_type<tc>, window_params = [{transform_indices = @transform_0, window_bounds = array<i64: 8, 16>}, {pipeline_mode = #tpu.pipeline_mode<synchronous>, transform_indices = @transform_1, window_bounds = array<i64: 272, 128>}, {pipeline_mode = #tpu.pipeline_mode<synchronous>, transform_indices = @transform_2, window_bounds = array<i64: 8, 128>}, {transform_indices = @transform_3, window_bounds = array<i64: 8, 128>}]} {
    %c0 = arith.constant 0 : index
    %c0_0 = arith.constant 0 : index
    %0 = vector.load %arg1[%c0, %c0_0] : memref<8x16xf32, #tpu.memory_space<vmem>>, vector<8x16xf32>
    %c0_1 = arith.constant 0 : index
    %c0_2 = arith.constant 0 : index
    %1 = vector.load %arg2[%c0_1, %c0_2] : memref<272x128xbf16, #tpu.memory_space<vmem>>, vector<16x128xbf16>
    %2 = arith.extf %1 : vector<16x128xbf16> to vector<16x128xf32>
    %c16 = arith.constant 16 : index
    %c0_3 = arith.constant 0 : index
    %3 = vector.load %arg2[%c16, %c0_3] : memref<272x128xbf16, #tpu.memory_space<vmem>>, vector<128x128xbf16>
    %4 = arith.extf %3 : vector<128x128xbf16> to vector<128x128xf32>
    %c144 = arith.constant 144 : index
    %c0_4 = arith.constant 0 : index
    %5 = vector.load %arg2[%c144, %c0_4] : memref<272x128xbf16, #tpu.memory_space<vmem>>, vector<128x128xbf16>
    %6 = arith.extf %5 : vector<128x128xbf16> to vector<128x128xf32>
    %c0_5 = arith.constant 0 : index
    %c0_6 = arith.constant 0 : index
    %7 = vector.load %arg3[%c0_5, %c0_6] : memref<8x128xbf16, #tpu.memory_space<vmem>>, vector<1x128xbf16>
    %8 = arith.extf %7 : vector<1x128xbf16> to vector<1x128xf32>
    %c1 = arith.constant 1 : index
    %c0_7 = arith.constant 0 : index
    %9 = vector.load %arg3[%c1, %c0_7] : memref<8x128xbf16, #tpu.memory_space<vmem>>, vector<1x128xbf16>
    %10 = arith.extf %9 : vector<1x128xbf16> to vector<1x128xf32>
    %c2 = arith.constant 2 : index
    %c0_8 = arith.constant 0 : index
    %11 = vector.load %arg3[%c2, %c0_8] : memref<8x128xbf16, #tpu.memory_space<vmem>>, vector<1x128xbf16>
    %12 = arith.extf %11 : vector<1x128xbf16> to vector<1x128xf32>
    %cst = arith.constant dense<0.000000e+00> : vector<8x128xf32>
    %13 = tpu.matmul %0, %2, %cst {dimension_numbers = #tpu.dot_dimension_numbers<[1], [0], [0], [1], [0, 0, 1, 1], [], []>} : vector<8x16xf32>, vector<16x128xf32>, vector<8x128xf32> -> vector<8x128xf32>
    %14 = vector.broadcast %8 : vector<1x128xf32> to vector<8x128xf32>
    %15 = arith.addf %13, %14 : vector<8x128xf32>
    %cst_9 = arith.constant 0.000000e+00 : f32
    %16 = vector.broadcast %cst_9 : f32 to vector<8x128xf32>
    %17 = arith.maximumf %15, %16 : vector<8x128xf32>
    %cst_10 = arith.constant dense<0.000000e+00> : vector<8x128xf32>
    %18 = tpu.matmul %17, %4, %cst_10 {dimension_numbers = #tpu.dot_dimension_numbers<[1], [0], [0], [1], [0, 0, 1, 1], [], []>} : vector<8x128xf32>, vector<128x128xf32>, vector<8x128xf32> -> vector<8x128xf32>
    %19 = vector.broadcast %10 : vector<1x128xf32> to vector<8x128xf32>
    %20 = arith.addf %18, %19 : vector<8x128xf32>
    %cst_11 = arith.constant 0.000000e+00 : f32
    %21 = vector.broadcast %cst_11 : f32 to vector<8x128xf32>
    %22 = arith.maximumf %20, %21 : vector<8x128xf32>
    %cst_12 = arith.constant dense<0.000000e+00> : vector<8x128xf32>
    %23 = tpu.matmul %22, %6, %cst_12 {dimension_numbers = #tpu.dot_dimension_numbers<[1], [0], [0], [1], [0, 0, 1, 1], [], []>} : vector<8x128xf32>, vector<128x128xf32>, vector<8x128xf32> -> vector<8x128xf32>
    %24 = vector.broadcast %12 : vector<1x128xf32> to vector<8x128xf32>
    %25 = arith.addf %23, %24 : vector<8x128xf32>
    %26 = tpu.iota {dimensions = array<i32: 1>} : vector<8x128xi32>
    %c8_i32 = arith.constant 8 : i32
    %27 = vector.broadcast %c8_i32 : i32 to vector<8x128xi32>
    %28 = arith.cmpi slt, %26, %27 : vector<8x128xi32>
    %cst_13 = arith.constant -1.000000e+30 : f32
    %29 = vector.broadcast %cst_13 : f32 to vector<8x128xf32>
    %30 = arith.select %28, %25, %29 : vector<8x128xi1>, vector<8x128xf32>
    %cst_14 = arith.constant dense<0xFF800000> : vector<8xf32>
    %31 = vector.multi_reduction <maximumf>, %30, %cst_14 [1] : vector<8x128xf32> to vector<8xf32>
    %32 = vector.shape_cast %31 : vector<8xf32> to vector<8x1xf32>
    %33 = vector.broadcast %32 : vector<8x1xf32> to vector<8x128xf32>
    %34 = arith.subf %30, %33 : vector<8x128xf32>
    %35 = math.exp %34 : vector<8x128xf32>
    %cst_15 = arith.constant dense<0.000000e+00> : vector<8xf32>
    %36 = vector.multi_reduction <add>, %35, %cst_15 [1] : vector<8x128xf32> to vector<8xf32>
    %37 = vector.shape_cast %36 : vector<8xf32> to vector<8x1xf32>
    %38 = tpu.reciprocal %37 {approx = true} : vector<8x1xf32> -> vector<8x1xf32>
    %39 = vector.broadcast %38 : vector<8x1xf32> to vector<8x128xf32>
    %40 = arith.mulf %35, %39 : vector<8x128xf32>
    %c0_16 = arith.constant 0 : index
    %c0_17 = arith.constant 0 : index
    %41 = vector.load %arg4[%c0_16, %c0_17] : memref<8x128xf32, #tpu.memory_space<vmem>>, vector<8x128xf32>
    tpu.vector_store %arg4[%c0_16, %c0_17], %40 {strides = array<i32>} : memref<8x128xf32, #tpu.memory_space<vmem>>, vector<8x128xf32>,
    return
  }
  func.func @transform_0(%arg0: i32) -> (i32, i32) {
    %c0_i32 = arith.constant 0 : i32
    %c0_i32_0 = arith.constant 0 : i32
    return %arg0, %c0_i32 : i32, i32
  }
  func.func @transform_1(%arg0: i32) -> (i32, i32) {
    %c0_i32 = arith.constant 0 : i32
    %c0_i32_0 = arith.constant 0 : i32
    %c0_i32_1 = arith.constant 0 : i32
    return %c0_i32, %c0_i32_0 : i32, i32
  }
  func.func @transform_2(%arg0: i32) -> (i32, i32) {
    %c0_i32 = arith.constant 0 : i32
    %c0_i32_0 = arith.constant 0 : i32
    %c0_i32_1 = arith.constant 0 : i32
    return %c0_i32, %c0_i32_0 : i32, i32
  }
  func.func @transform_3(%arg0: i32) -> (i32, i32) {
    %c0_i32 = arith.constant 0 : i32
    %c0_i32_0 = arith.constant 0 : i32
    return %arg0, %c0_i32 : i32, i32
  }
}

</mosaic_0001>

<bundles_post_ra>
// kernel: tpu_custom_call.1
= control target key start
LH: loop header
LB: loop body
LE: loop exit
PB: predicated region body
PF: predicated region fallthrough
CT: control target
= control target key end

     0   :  { %8 = vsyncpa [#allocation3], 0  ;;  %s760_s0 = inlined_call_operand.hbm [shape: f32[8,16], index: 0, kind: input, shape index: {}]   ;;  %s761_s1 = inlined_call_operand.hbm [shape: bf16[272,128], index: 1, kind: input, shape index: {}]   ;;  %s762_s2 = inlined_call_operand.hbm [shape: bf16[8,128], index: 2, kind: input, shape index: {}]   ;;  %s763_s3 = inlined_call_operand.hbm [shape: f32[8,128], index: 3, kind: output, shape index: {}]  }
   0x1   :  { %9 = vsyncpa [#allocation6], 0 }
   0x2   :  { %10 = vsyncpa [#allocation4], 0  ;;  %s680_s12 = smov [#allocation5]  }
   0x3   :  { %s26_s13 = sshll.u32 %s680_s12, 4  ;;  %s27_s13 = int_to_ptr.vmem [resolvable:$true] %s26_s13 }
   0x4   :  { %s602_s14 = scalar_lea.vmem %s27_s13, 2176  ;;  %p607_p1 = scmp.lt.s32.totalorder %s27_s13, %s27_s13 }
   0x5   :  { %p603_p0 = scmp.ne.s32.totalorder %s27_s13, %s602_s14  ;;  %p608_p2 = scmp.lt.s32.totalorder %s602_s14, %s602_s14 }
   0x7   :  { %p609_p3 = por %p608_p2, %p607_p1 }
   0x9   :  { %p610_p4 = pnand %p609_p3, %p603_p0 }
   0xb   :  { %613 = shalt.err (!%p610_p4)
}
   0xc   :  { %s681_s15 = smov 64   ;;  %s682_s16 = smov 4  }
   0xd   :  { %32 = dma.hbm_to_vmem [thread:$0]  %s761_s1, 2176, %s27_s13, [#allocation6], %s681_s15, %s681_s15, %s682_s16  }
   0xe   :  { %s683_s19 = smov [#allocation2]   ;;  %s684_s21 = smov [#allocation7]  }
   0xf   :  { %s17_s20 = sshll.u32 %s683_s19, 4  ;;  %s39_s22 = sshll.u32 %s684_s21, 4  ;;  %s18_s20 = int_to_ptr.vmem [resolvable:$true] %s17_s20  ;;  %s40_s22 = int_to_ptr.vmem [resolvable:$true] %s39_s22 }
  0x10   :  { %s622_s23 = scalar_lea.vmem %s18_s20, 128  ;;  %p627_p6 = scmp.lt.s32.totalorder %s18_s20, %s18_s20 }
  0x11   :  { %p623_p5 = scmp.ne.s32.totalorder %s18_s20, %s622_s23  ;;  %p628_p7 = scmp.lt.s32.totalorder %s622_s23, %s622_s23 }
  0x13   :  { %p629_p8 = por %p628_p7, %p627_p6 }
  0x15   :  { %p630_p9 = pnand %p629_p8, %p623_p5 }
  0x17   :  { %633 = shalt.err (!%p630_p9)
}
  0x18   :  { %20 = dma.hbm_to_vmem [thread:$0]  %s760_s0, 128, %s18_s20, [#allocation3]  }
  0x19   :  { %s642_s26 = scalar_lea.vmem %s40_s22, 64  ;;  %p647_p11 = scmp.lt.s32.totalorder %s40_s22, %s40_s22 }
  0x1a   :  { %p643_p10 = scmp.ne.s32.totalorder %s40_s22, %s642_s26  ;;  %p648_p12 = scmp.lt.s32.totalorder %s642_s26, %s642_s26 }
  0x1c   :  { %p649_p13 = por %p648_p12, %p647_p11 }
  0x1e   :  { %p650_p0 = pnand %p649_p13, %p643_p10 }
  0x20   :  { %653 = shalt.err (!%p650_p0)
}
  0x21   :  { %42 = dma.hbm_to_vmem [thread:$0]  %s762_s2, 64, %s40_s22, [#allocation6]  }
  0x22   :  { %674 = dma.done.wait [#allocation3], 128  }
  0x23   :  { %675 = vsyncadd [#allocation3], 4294967168 }
  0x24   :  { %676 = dma.done.wait [#allocation6], 2240  }
  0x25   :  { %677 = vsyncadd [#allocation6], 4294965056  ;;  %v685_v0 = vmov 0.0   ;;  %vm686_vm0 = vmmov 0   ;;  %v385_v1 = vld [vmem:[#allocation5] sm:$0xff]   ;;  %v458_v7 = vld [vmem:[#allocation5 + $0x38] sm:$0xff]   ;;  %v125_v49 = vlaneseq }
  0x26   :  { %505 = vmatprep.subr.mxu0 %v685_v0  ;;  %509 = vmatprep.mubr.msk.f32.mxu0 %vm686_vm0, %v685_v0  ;;  %v459_v2 = vld [vmem:[#allocation5 + $0x40] sm:$0xff]   ;;  %v386_v3 = vunpack.c.l.bf16 %v385_v1  ;;  %v387_v4 = vunpack.c.h.bf16 %v385_v1  ;;  %v52_v8 = vld [vmem:[#allocation2] sm:$0xff]  ;;  %vm129_vm1 = vcmask 130048   ;;  %v415_v9 = vunpack.c.h.bf16 %v458_v7  ;;  %v457_v10 = vld [vmem:[#allocation5 + $0x30] sm:$0xff]   ;;  %s687_s0 = smov [#allocation8]  }
  0x27   :  { %512 = vmatprep.subr.mxu1 %v685_v0  ;;  %544 = vmatprep.mubr.msk.f32.mxu1 %vm686_vm0, %v685_v0  ;;  %v418_v5 = vunpack.c.l.bf16 %v459_v2  ;;  %v419_v6 = vunpack.c.h.bf16 %v459_v2  ;;  %v414_v11 = vunpack.c.l.bf16 %v458_v7  ;;  %v411_v12 = vunpack.c.h.bf16 %v457_v10  ;;  %v456_v13 = vld [vmem:[#allocation5 + $0x28] sm:$0xff]   ;;  %v455_v16 = vld [vmem:[#allocation5 + $0x20] sm:$0xff]   ;;  %v454_v19 = vld [vmem:[#allocation5 + $0x18] sm:$0xff]   ;;  %s373_s2 = sshll.u32 %s687_s0, 4  ;;  %s374_s2 = int_to_ptr.vmem [resolvable:$true] %s373_s2 }
  0x28   :  { %506 = vmatpush3.msra.mxu0 %v387_v4  ;;  %v410_v14 = vunpack.c.l.bf16 %v457_v10  ;;  %v407_v15 = vunpack.c.h.bf16 %v456_v13  ;;  %v406_v17 = vunpack.c.l.bf16 %v456_v13  ;;  %v403_v18 = vunpack.c.h.bf16 %v455_v16  ;;  %v453_v22 = vld [vmem:[#allocation5 + $0x10] sm:$0xff]   ;;  %v452_v26 = vld [vmem:[#allocation5 + $0x8] sm:$0xff]   ;;  %v467_v29 = vld [vmem:[#allocation5 + $0x80] sm:$0xff]   ;;  %s654_s28 = scalar_lea.vmem %s374_s2, 128  ;;  %p659_p2 = scmp.lt.s32.totalorder %s374_s2, %s374_s2 }
  0x29   :  { %513 = vmatpush3.msra.mxu1 %v419_v6  ;;  %507 = vmatprep.subr.mxu0 %v685_v0  ;;  %v402_v20 = vunpack.c.l.bf16 %v455_v16  ;;  %v399_v21 = vunpack.c.h.bf16 %v454_v19  ;;  %v398_v23 = vunpack.c.l.bf16 %v454_v19  ;;  %v395_v24 = vunpack.c.h.bf16 %v453_v22  ;;  %v466_v30 = vld [vmem:[#allocation5 + $0x78] sm:$0xff]   ;;  %v465_v34 = vld [vmem:[#allocation5 + $0x70] sm:$0xff]   ;;  %v464_v37 = vld [vmem:[#allocation5 + $0x68] sm:$0xff]   ;;  %p655_p1 = scmp.ne.s32.totalorder %s374_s2, %s654_s28  ;;  %p660_p3 = scmp.lt.s32.totalorder %s654_s28, %s654_s28 }
  0x2a   :  { %514 = vmatprep.subr.mxu1 %v685_v0  ;;  %508 = vmatpush3.msra.mxu0 %v386_v3  ;;  %v394_v25 = vunpack.c.l.bf16 %v453_v22  ;;  %v391_v27 = vunpack.c.h.bf16 %v452_v26  ;;  %v390_v28 = vunpack.c.l.bf16 %v452_v26  ;;  %v451_v31 = vunpack.c.h.bf16 %v467_v29  ;;  %v463_v40 = vld [vmem:[#allocation5 + $0x60] sm:$0xff]   ;;  %v462_v43 = vld [vmem:[#allocation5 + $0x58] sm:$0xff]   ;;  %v461_v46 = vld [vmem:[#allocation5 + $0x50] sm:$0xff]  }
  0x2b   :  { %515 = vmatpush3.msra.mxu1 %v418_v5  ;;  %510 = vmatmul.mubr.msk.f32.vlgmr.msra.gmra.mxu0 %vm129_vm1, %v52_v8  ;;  %v450_v32 = vunpack.c.l.bf16 %v467_v29  ;;  %v447_v33 = vunpack.c.h.bf16 %v466_v30  ;;  %v446_v35 = vunpack.c.l.bf16 %v466_v30  ;;  %v443_v36 = vunpack.c.h.bf16 %v465_v34  ;;  %v121_v51 = vld [vmem:[#allocation7] sm:$0x1]  ;;  %v123_v6 = vld [vmem:[#allocation7] sm:$0x2]  ;;  %p661_p4 = por %p660_p3, %p659_p2 }
  0x2c   :  { %516 = vmatprep.subr.mxu1 %v685_v0  ;;  %547 = vmatprep.subr.mxu0 %v685_v0  ;;  %v442_v38 = vunpack.c.l.bf16 %v465_v34  ;;  %v439_v39 = vunpack.c.h.bf16 %v464_v37  ;;  %v438_v41 = vunpack.c.l.bf16 %v464_v37  ;;  %v435_v42 = vunpack.c.h.bf16 %v463_v40  ;;  %v460_v60 = vld [vmem:[#allocation5 + $0x48] sm:$0xff]  }
  0x2d   :  { %517 = vmatpush3.msra.mxu1 %v415_v9  ;;  %579 = vmatprep.mubr.msk.f32.mxu0 %vm686_vm0, %v685_v0  ;;  %v434_v44 = vunpack.c.l.bf16 %v463_v40  ;;  %v431_v45 = vunpack.c.h.bf16 %v462_v43  ;;  %v430_v47 = vunpack.c.l.bf16 %v462_v43  ;;  %v427_v48 = vunpack.c.h.bf16 %v461_v46  ;;  %p662_p5 = pnand %p661_p4, %p655_p1 }
  0x2e   :  { %518 = vmatprep.subr.mxu1 %v685_v0  ;;  %548 = vmatpush3.msra.mxu0 %v451_v31  ;;  %v126_v50 = vshrl.u32 %v125_v49, 7  ;;  %v122_v52 = vunpack.c.l.bf16 %v121_v51  ;;  %v426_v59 = vunpack.c.l.bf16 %v461_v46  ;;  %v423_v61 = vunpack.c.h.bf16 %v460_v60 }
  0x2f   :  { %519 = vmatpush3.msra.mxu1 %v414_v11  ;;  %549 = vmatprep.subr.mxu0 %v685_v0  ;;  %v422_v62 = vunpack.c.l.bf16 %v460_v60  ;;  %v124_v7 = vunpack.c.l.bf16 %v123_v6  ;;  %v354_v9 = vand.u32 127, %v125_v49 }
  0x30   :  { %520 = vmatprep.subr.mxu1 %v685_v0  ;;  %550 = vmatpush3.msra.mxu0 %v450_v32  ;;  %v127_v53 = vsub.s32 0, %v126_v50  ;;  %v206_v63 = vsub.s32 1, %v126_v50  ;;  %v281_v8 = vsub.s32 2, %v126_v50 }
  0x31   :  { %521 = vmatpush3.msra.mxu1 %v411_v12  ;;  %551 = vmatprep.subr.mxu0 %v685_v0  ;;  %vm355_vm2 = vcmp.lt.s32.totalorder %v354_v9, 8 }
  0x32   :  { %522 = vmatprep.subr.mxu1 %v685_v0  ;;  %552 = vmatpush3.msra.mxu0 %v447_v33  ;;  %v128_v54 = vrot.slane %v122_v52, %v127_v53  ;;  %v207_v1 = vrot.slane %v122_v52, %v206_v63  ;;  %v282_v10 = vrot.slane %v124_v7, %v281_v8 }
  0x33   :  { %523 = vmatpush3.msra.mxu1 %v410_v14  ;;  %553 = vmatprep.subr.mxu0 %v685_v0 }
  0x34   :  { %524 = vmatprep.subr.mxu1 %v685_v0  ;;  %554 = vmatpush3.msra.mxu0 %v446_v35 }
  0x35   :  { %525 = vmatpush3.msra.mxu1 %v407_v15  ;;  %555 = vmatprep.subr.mxu0 %v685_v0 }
  0x36   :  { %526 = vmatprep.subr.mxu1 %v685_v0  ;;  %556 = vmatpush3.msra.mxu0 %v443_v36 }
  0x37   :  { %527 = vmatpush3.msra.mxu1 %v406_v17  ;;  %557 = vmatprep.subr.mxu0 %v685_v0 }
  0x38   :  { %528 = vmatprep.subr.mxu1 %v685_v0  ;;  %558 = vmatpush3.msra.mxu0 %v442_v38 }
  0x39   :  { %529 = vmatpush3.msra.mxu1 %v403_v18  ;;  %559 = vmatprep.subr.mxu0 %v685_v0 }
  0x3a   :  { %530 = vmatprep.subr.mxu1 %v685_v0  ;;  %560 = vmatpush3.msra.mxu0 %v439_v39 }
  0x3b   :  { %531 = vmatpush3.msra.mxu1 %v402_v20  ;;  %561 = vmatprep.subr.mxu0 %v685_v0 }
  0x3c   :  { %532 = vmatprep.subr.mxu1 %v685_v0  ;;  %562 = vmatpush3.msra.mxu0 %v438_v41 }
  0x3d   :  { %533 = vmatpush3.msra.mxu1 %v399_v21  ;;  %563 = vmatprep.subr.mxu0 %v685_v0 }
  0x3e   :  { %534 = vmatprep.subr.mxu1 %v685_v0  ;;  %564 = vmatpush3.msra.mxu0 %v435_v42 }
  0x3f   :  { %535 = vmatpush3.msra.mxu1 %v398_v23  ;;  %565 = vmatprep.subr.mxu0 %v685_v0 }
  0x40   :  { %536 = vmatprep.subr.mxu1 %v685_v0  ;;  %566 = vmatpush3.msra.mxu0 %v434_v44 }
  0x41   :  { %537 = vmatpush3.msra.mxu1 %v395_v24  ;;  %567 = vmatprep.subr.mxu0 %v685_v0 }
  0x42   :  { %538 = vmatprep.subr.mxu1 %v685_v0  ;;  %568 = vmatpush3.msra.mxu0 %v431_v45 }
  0x43   :  { %539 = vmatpush3.msra.mxu1 %v394_v25  ;;  %569 = vmatprep.subr.mxu0 %v685_v0 }
  0x44   :  { %540 = vmatprep.subr.mxu1 %v685_v0  ;;  %570 = vmatpush3.msra.mxu0 %v430_v47 }
  0x45   :  { %541 = vmatpush3.msra.mxu1 %v391_v27  ;;  %571 = vmatprep.subr.mxu0 %v685_v0 }
  0x46   :  { %542 = vmatprep.subr.mxu1 %v685_v0  ;;  %572 = vmatpush3.msra.mxu0 %v427_v48 }
  0x47   :  { %543 = vmatpush3.msra.mxu1 %v390_v28  ;;  %573 = vmatprep.subr.mxu0 %v685_v0 }
  0x48   :  { %574 = vmatpush3.msra.mxu0 %v426_v59 }
  0x49   :  { %575 = vmatprep.subr.mxu0 %v685_v0 }
  0x4a   :  { %576 = vmatpush3.msra.mxu0 %v423_v61 }
  0x4b   :  { %577 = vmatprep.subr.mxu0 %v685_v0 }
  0x4c   :  { %578 = vmatpush3.msra.mxu0 %v422_v62 }
  0xeb   :  { %v199_v55 = vpop.f32.mrf.mxu0 }
  0xec   :  { %v200_v56 = vadd.f32 %v199_v55, %v128_v54 }
  0xed   :  { %v511_v57 = vpop.f32.mrf.mxu0 }
  0xee   :  { %v203_v58 = vmax.f32 %v200_v56, 0.0 }
  0xf0   :  { %545 = vmatmul.mubr.f32.vlgmr.msra.gmra.mxu1 %v203_v58 }
 0x1b0   :  { %v274_v2 = vpop.f32.mrf.mxu1 }
 0x1b1   :  { %v275_v3 = vadd.f32 %v274_v2, %v207_v1 }
 0x1b2   :  { %v546_v4 = vpop.f32.mrf.mxu1 }
 0x1b3   :  { %v278_v5 = vmax.f32 %v275_v3, 0.0 }
 0x1b5   :  { %580 = vmatmul.mubr.f32.vlgmr.msra.gmra.mxu0 %v278_v5 }
 0x275   :  { %v349_v11 = vpop.f32.mrf.mxu0 }
 0x276   :  { %v350_v12 = vadd.f32 %v349_v11, %v282_v10 }
 0x277   :  { %v581_v13 = vpop.f32.mrf.mxu0 }
 0x278   :  { %v356_v14 = vsel %vm355_vm2, %v350_v12, -1e+30 }
 0x279   :  { %357 = vmax.xlane.f32.xlu0 %v356_v14 }
 0x302   :  { %v358_v0 = vpop.xlane.xlu0 %357 }
 0x303   :  { %v359_v15 = vsub.f32 %v356_v14, %v358_v0 }
 0x305   :  { %v360_v16 = vmul.f32 1.442695, %v359_v15 }
 0x307   :  { %590 = vpow2.f32 %v360_v16 }
 0x314   :  { %v591_v17 = vpop.eup %590 }
 0x315   :  { %362 = vadd.xlane.f32.xlu0 %v591_v17 }
 0x39e   :  { %v363_v18 = vpop.xlane.xlu0 %362 }
 0x39f   :  { %592 = vrcp.f32 %v363_v18 }
 0x3ac   :  { %v593_v19 = vpop.eup %592 }
 0x3ad   :  { %v365_v20 = vmul.f32 %v593_v19, %v591_v17 }
 0x3af   :  { %366 = vst [vmem:[#allocation8] sm:$0xff] %v365_v20 }
 0x3b0   :  { %665 = shalt.err (!%p662_p5)
}
 0x3b1   :  { %376 = dma.vmem_to_hbm [thread:$0]  %s374_s2, 128, %s763_s3, [#allocation4]  }
 0x3b2   :  { %678 = dma.done.wait [#allocation4], 128  }
 0x3b3   :  { %679 = vsyncadd [#allocation4], 4294967168 }
 0x3b4   :  { %380 = vsyncpa [#allocation3], 1 }
 0x3b5   :  { %381 = vsyncpa [#allocation6], 1 }
 0x3b6   :  { %382 = vsyncpa [#allocation4], 1 }

</bundles_post_ra>
